<compile_context>
chip_gen: v7x
topology: tpu7x:2x2x1
jax: 0.10.0
libtpu: 0.0.40
codegen_flags: <defaults>
</compile_context>

<pallas_src>
import numpy as np
import jax
import jax.numpy as jnp
from jax.experimental import pallas as pl
from jax.experimental.pallas import tpu as pltpu


# ---------------------------------------------------------------------------
# Fused kernel: conv1x1 -> Gaussian/Laplacian pyramid -> |feat - template| ->
# compose_pyramid -> per-image channel mean, ALL batch elements in one pass.
# ---------------------------------------------------------------------------
def _make_fused_kernel(num_levels):
    n_res = num_levels - 1  # number of down/up resampling steps

    def kernel(*refs):
        w_ref = refs[0]                                   # [B*C, B*Cin+1]
        x_ref = refs[1]                                   # [B*Cin+1, HW0]
        avg_ref = refs[2]                                 # [B, B*C]
        tmpl_refs = refs[3:3 + num_levels]                # [B*C, HW_l]
        down_refs = refs[3 + num_levels:3 + num_levels + n_res]
        up_refs = refs[3 + num_levels + n_res:3 + num_levels + 2 * n_res]
        out_ref = refs[-1]                                # [B, HW0]

        # ---- 1x1 conv + bias as ONE MXU dot (block-diag W, homogeneous bias)
        feat = jnp.dot(w_ref[...], x_ref[...],
                       preferred_element_type=jnp.float32)   # [B*C, HW0]

        # ---- Gaussian pyramid: 2x avg-pool == matmul with pooling matrix ----
        gauss = [feat]
        for l in range(n_res):
            gauss.append(jnp.dot(gauss[-1], down_refs[l][...],
                                 preferred_element_type=jnp.float32))

        # ---- Laplacian levels and |level - template| -------------------------
        diffs = []
        for l in range(n_res):
            up = jnp.dot(gauss[l + 1], up_refs[l][...],
                         preferred_element_type=jnp.float32)
            diffs.append(jnp.abs(gauss[l] - up - tmpl_refs[l][...]))
        diffs.append(jnp.abs(gauss[num_levels - 1]
                             - tmpl_refs[num_levels - 1][...]))

        # ---- compose_pyramid (nearest-upsample + add), coarse -> fine --------
        # At these sizes everything is a handful of vregs; for large H*W this
        # walk should be restructured to drop gauss[l]/diffs[l] as consumed.
        recon = diffs[num_levels - 1]
        for l in range(num_levels - 2, -1, -1):
            recon = jnp.dot(recon, up_refs[l][...],
                            preferred_element_type=jnp.float32) + diffs[l]

        # ---- per-image channel mean via tiny block-diag averaging matmul -----
        out_ref[...] = jnp.dot(avg_ref[...], recon,
                               preferred_element_type=jnp.float32)  # [B, HW0]

    return kernel


# ---------------------------------------------------------------------------
# Host-side constant resampling matrices (built once per call, tiny).
# ---------------------------------------------------------------------------
def _pool_matrix(h, w):
    """P[p, q] = 0.25 if fine pixel p (row-major) lies in coarse block q."""
    hc, wc = h // 2, w // 2
    p = np.zeros((h * w, hc * wc), np.float32)
    for r in range(h):
        for c in range(w):
            p[r * w + c, (r // 2) * wc + (c // 2)] = 0.25
    return jnp.asarray(p)


# ---------------------------------------------------------------------------
# Public wrapper: NCHW in, NCHW [B, 1, H, W] out.
# ---------------------------------------------------------------------------
def ipyramidflow_forward(image_nchw, conv_w, conv_b, feat_mean):
    image = image_nchw.astype(jnp.float32)
    B, c_in, H, W = image.shape
    c_out = conv_w.shape[0]
    L = len(feat_mean)
    assert H % (1 << (L - 1)) == 0 and W % (1 << (L - 1)) == 0, \
        "spatial dims must be divisible by 2**(L-1)"

    hw = [(H >> l) * (W >> l) for l in range(L)]          # lane-dense sizes

    # Batch folded into the matmul M dimension: images stacked as [B*Cin, HW0]
    # with a trailing ones-row so the bias rides in the same dot.
    x_stack = image.reshape(B * c_in, hw[0])
    x_aug = jnp.concatenate(
        [x_stack, jnp.ones((1, hw[0]), jnp.float32)], axis=0)     # [B*Cin+1, HW0]

    # Block-diagonal conv weights + bias column (homogeneous coordinate).
    w_blk = jnp.kron(jnp.eye(B, dtype=jnp.float32),
                     conv_w.astype(jnp.float32))                  # [B*C, B*Cin]
    b_col = jnp.tile(conv_b.astype(jnp.float32), B).reshape(B * c_out, 1)
    w_aug = jnp.concatenate([w_blk, b_col], axis=1)               # [B*C, B*Cin+1]

    # Block-diagonal 1/C averaging matrix for the per-image channel mean.
    avg = jnp.kron(jnp.eye(B, dtype=jnp.float32),
                   jnp.full((1, c_out), 1.0 / c_out, jnp.float32))  # [B, B*C]

    # Templates tiled across the batch rows (tiny; parameters, not activations).
    tmpls = [jnp.tile(t.astype(jnp.float32).reshape(c_out, hw[l]), (B, 1))
             for l, t in enumerate(feat_mean)]                    # [B*C, HW_l]

    downs = [_pool_matrix(H >> l, W >> l) for l in range(L - 1)]
    ups = [4.0 * jnp.transpose(d) for d in downs]                 # nearest upsample

    vmem = pltpu.MemorySpace.VMEM
    n_in = 3 + L + 2 * (L - 1)
    out = pl.pallas_call(
        _make_fused_kernel(L),
        out_shape=jax.ShapeDtypeStruct((B, hw[0]), jnp.float32),
        in_specs=[pl.BlockSpec(memory_space=vmem)] * n_in,
        out_specs=pl.BlockSpec(memory_space=vmem),
    )(w_aug, x_aug, avg, *tmpls, *downs, *ups)

    return out.reshape(B, 1, H, W)                        # NCHW [B,1,H,W]


# ---------------------------------------------------------------------------
# Pure-JAX reference (same synthesized flow), for correctness checking.
# ---------------------------------------------------------------------------
def _ref_forward(image_nchw, conv_w, conv_b, feat_mean):
    x = image_nchw.astype(jnp.float32)
    feat = jnp.einsum('oc,bchw->bohw', conv_w, x,
                      precision=jax.lax.Precision.HIGHEST)
    feat = feat + conv_b[None, :, None, None]
    L = len(feat_mean)

    def pool2(t):
        b, c, h, w = t.shape
        return t.reshape(b, c, h // 2, 2, w // 2, 2).mean(axis=(3, 5))

    def up2(t):
        return jnp.repeat(jnp.repeat(t, 2, axis=2), 2, axis=3)

    gauss = [feat]
    for _ in range(L - 1):
        gauss.append(pool2(gauss[-1]))
    pyr = [gauss[l] - up2(gauss[l + 1]) for l in range(L - 1)] + [gauss[-1]]
    diffs = [jnp.abs(f - t) for f, t in zip(pyr, feat_mean)]
    recon = diffs[-1]
    for l in range(L - 2, -1, -1):
        recon = up2(recon) + diffs[l]
    return jnp.mean(recon, axis=1, keepdims=True)


# ---------------------------------------------------------------------------
if __name__ == "__main__":
    B, Cin, H, W = 2, 4, 16, 16     # image: NCHW, like the PyTorch module
    C = 8                           # flow feature channels
    L = 3                           # pyramid levels: 16x16, 8x8, 4x4

    key = jax.random.PRNGKey(0)
    keys = jax.random.split(key, 3 + L)
    image = jax.random.normal(keys[0], (B, Cin, H, W), dtype=jnp.float32)
    conv_w = jax.random.normal(keys[1], (C, Cin), dtype=jnp.float32) * 0.1
    conv_b = jax.random.normal(keys[2], (C,), dtype=jnp.float32) * 0.1
    # feat_mean templates, one per pyramid level (NCHW, batch dim 1).
    feat_mean = [
        jax.random.normal(keys[3 + l], (1, C, H >> l, W >> l),
                          dtype=jnp.float32) * 0.1
        for l in range(L)
    ]

    out = ipyramidflow_forward(image, conv_w, conv_b, feat_mean)
    out = jax.block_until_ready(out)
    assert out.shape == (B, 1, H, W), out.shape

    ref = _ref_forward(image, conv_w, conv_b, feat_mean)
    np.testing.assert_allclose(np.asarray(out), np.asarray(ref),
                               rtol=1e-3, atol=1e-3)
    print("KERNEL_OK")
</pallas_src>

<mosaic_0001>
module attributes {stable_mosaic.version = 11 : i64} {
  func.func @kernel(%arg0: memref<16x9xf32, #tpu.memory_space<vmem>>, %arg1: memref<9x256xf32, #tpu.memory_space<vmem>>, %arg2: memref<2x16xf32, #tpu.memory_space<vmem>>, %arg3: memref<16x256xf32, #tpu.memory_space<vmem>>, %arg4: memref<16x64xf32, #tpu.memory_space<vmem>>, %arg5: memref<16x16xf32, #tpu.memory_space<vmem>>, %arg6: memref<256x64xf32, #tpu.memory_space<vmem>>, %arg7: memref<64x16xf32, #tpu.memory_space<vmem>>, %arg8: memref<64x256xf32, #tpu.memory_space<vmem>>, %arg9: memref<16x64xf32, #tpu.memory_space<vmem>>, %arg10: memref<2x256xf32, #tpu.memory_space<vmem>>) attributes {dimension_semantics = [], scalar_prefetch = 0 : i64, scratch_operands = 0 : i64, tpu.core_type = #tpu.core_type<tc>} {
    %c0 = arith.constant 0 : index
    %c0_0 = arith.constant 0 : index
    %0 = vector.load %arg0[%c0, %c0_0] : memref<16x9xf32, #tpu.memory_space<vmem>>, vector<16x9xf32>
    %c0_1 = arith.constant 0 : index
    %c0_2 = arith.constant 0 : index
    %1 = vector.load %arg1[%c0_1, %c0_2] : memref<9x256xf32, #tpu.memory_space<vmem>>, vector<9x256xf32>
    %cst = arith.constant dense<0.000000e+00> : vector<16x256xf32>
    %2 = tpu.matmul %0, %1, %cst {dimension_numbers = #tpu.dot_dimension_numbers<[1], [0], [0], [1], [0, 0, 1, 1], [], []>} : vector<16x9xf32>, vector<9x256xf32>, vector<16x256xf32> -> vector<16x256xf32>
    %c0_3 = arith.constant 0 : index
    %c0_4 = arith.constant 0 : index
    %3 = vector.load %arg6[%c0_3, %c0_4] : memref<256x64xf32, #tpu.memory_space<vmem>>, vector<256x64xf32>
    %cst_5 = arith.constant dense<0.000000e+00> : vector<16x64xf32>
    %4 = tpu.matmul %2, %3, %cst_5 {dimension_numbers = #tpu.dot_dimension_numbers<[1], [0], [0], [1], [0, 0, 1, 1], [], []>} : vector<16x256xf32>, vector<256x64xf32>, vector<16x64xf32> -> vector<16x64xf32>
    %c0_6 = arith.constant 0 : index
    %c0_7 = arith.constant 0 : index
    %5 = vector.load %arg7[%c0_6, %c0_7] : memref<64x16xf32, #tpu.memory_space<vmem>>, vector<64x16xf32>
    %cst_8 = arith.constant dense<0.000000e+00> : vector<16x16xf32>
    %6 = tpu.matmul %4, %5, %cst_8 {dimension_numbers = #tpu.dot_dimension_numbers<[1], [0], [0], [1], [0, 0, 1, 1], [], []>} : vector<16x64xf32>, vector<64x16xf32>, vector<16x16xf32> -> vector<16x16xf32>
    %c0_9 = arith.constant 0 : index
    %c0_10 = arith.constant 0 : index
    %7 = vector.load %arg8[%c0_9, %c0_10] : memref<64x256xf32, #tpu.memory_space<vmem>>, vector<64x256xf32>
    %cst_11 = arith.constant dense<0.000000e+00> : vector<16x256xf32>
    %8 = tpu.matmul %4, %7, %cst_11 {dimension_numbers = #tpu.dot_dimension_numbers<[1], [0], [0], [1], [0, 0, 1, 1], [], []>} : vector<16x64xf32>, vector<64x256xf32>, vector<16x256xf32> -> vector<16x256xf32>
    %9 = arith.subf %2, %8 : vector<16x256xf32>
    %c0_12 = arith.constant 0 : index
    %c0_13 = arith.constant 0 : index
    %10 = vector.load %arg3[%c0_12, %c0_13] : memref<16x256xf32, #tpu.memory_space<vmem>>, vector<16x256xf32>
    %11 = arith.subf %9, %10 : vector<16x256xf32>
    %12 = math.absf %11 : vector<16x256xf32>
    %c0_14 = arith.constant 0 : index
    %c0_15 = arith.constant 0 : index
    %13 = vector.load %arg9[%c0_14, %c0_15] : memref<16x64xf32, #tpu.memory_space<vmem>>, vector<16x64xf32>
    %cst_16 = arith.constant dense<0.000000e+00> : vector<16x64xf32>
    %14 = tpu.matmul %6, %13, %cst_16 {dimension_numbers = #tpu.dot_dimension_numbers<[1], [0], [0], [1], [0, 0, 1, 1], [], []>} : vector<16x16xf32>, vector<16x64xf32>, vector<16x64xf32> -> vector<16x64xf32>
    %15 = arith.subf %4, %14 : vector<16x64xf32>
    %c0_17 = arith.constant 0 : index
    %c0_18 = arith.constant 0 : index
    %16 = vector.load %arg4[%c0_17, %c0_18] : memref<16x64xf32, #tpu.memory_space<vmem>>, vector<16x64xf32>
    %17 = arith.subf %15, %16 : vector<16x64xf32>
    %18 = math.absf %17 : vector<16x64xf32>
    %c0_19 = arith.constant 0 : index
    %c0_20 = arith.constant 0 : index
    %19 = vector.load %arg5[%c0_19, %c0_20] : memref<16x16xf32, #tpu.memory_space<vmem>>, vector<16x16xf32>
    %20 = arith.subf %6, %19 : vector<16x16xf32>
    %21 = math.absf %20 : vector<16x16xf32>
    %c0_21 = arith.constant 0 : index
    %c0_22 = arith.constant 0 : index
    %22 = vector.load %arg9[%c0_21, %c0_22] : memref<16x64xf32, #tpu.memory_space<vmem>>, vector<16x64xf32>
    %cst_23 = arith.constant dense<0.000000e+00> : vector<16x64xf32>
    %23 = tpu.matmul %21, %22, %cst_23 {dimension_numbers = #tpu.dot_dimension_numbers<[1], [0], [0], [1], [0, 0, 1, 1], [], []>} : vector<16x16xf32>, vector<16x64xf32>, vector<16x64xf32> -> vector<16x64xf32>
    %24 = arith.addf %23, %18 : vector<16x64xf32>
    %c0_24 = arith.constant 0 : index
    %c0_25 = arith.constant 0 : index
    %25 = vector.load %arg8[%c0_24, %c0_25] : memref<64x256xf32, #tpu.memory_space<vmem>>, vector<64x256xf32>
    %cst_26 = arith.constant dense<0.000000e+00> : vector<16x256xf32>
    %26 = tpu.matmul %24, %25, %cst_26 {dimension_numbers = #tpu.dot_dimension_numbers<[1], [0], [0], [1], [0, 0, 1, 1], [], []>} : vector<16x64xf32>, vector<64x256xf32>, vector<16x256xf32> -> vector<16x256xf32>
    %27 = arith.addf %26, %12 : vector<16x256xf32>
    %c0_27 = arith.constant 0 : index
    %c0_28 = arith.constant 0 : index
    %28 = vector.load %arg2[%c0_27, %c0_28] : memref<2x16xf32, #tpu.memory_space<vmem>>, vector<2x16xf32>
    %cst_29 = arith.constant dense<0.000000e+00> : vector<2x256xf32>
    %29 = tpu.matmul %28, %27, %cst_29 {dimension_numbers = #tpu.dot_dimension_numbers<[1], [0], [0], [1], [0, 0, 1, 1], [], []>} : vector<2x16xf32>, vector<16x256xf32>, vector<2x256xf32> -> vector<2x256xf32>
    %c0_30 = arith.constant 0 : index
    %c0_31 = arith.constant 0 : index
    %30 = vector.load %arg10[%c0_30, %c0_31] : memref<2x256xf32, #tpu.memory_space<vmem>>, vector<2x256xf32>
    tpu.vector_store %arg10[%c0_30, %c0_31], %29 {strides = array<i32>} : memref<2x256xf32, #tpu.memory_space<vmem>>, vector<2x256xf32>,
    return
  }
}

</mosaic_0001>

<bundles_post_ra>
// kernel: tpu_custom_call.1
= control target key start
LH: loop header
LB: loop body
LE: loop exit
PB: predicated region body
PF: predicated region fallthrough
CT: control target
= control target key end

     0   :  { %vm49_vm0 = vcmask 1040384   ;;  %vm1032_vm1 = vmmov 1   ;;  %v1033_v6 = vmov 0.0   ;;  %vm42_vm3 = vcmask 72704   ;;  %s1357_s0 = inlined_call_operand.vmem [shape: f32[16,9], index: 0, kind: input, shape index: {}]   ;;  %s1358_s1 = inlined_call_operand.vmem [shape: f32[9,256], index: 1, kind: input, shape index: {}]   ;;  %s1359_s2 = inlined_call_operand.vmem [shape: f32[2,16], index: 2, kind: input, shape index: {}]   ;;  %s1360_s3 = inlined_call_operand.vmem [shape: f32[16,256], index: 3, kind: input, shape index: {}]   ;;  %s1361_s4 = inlined_call_operand.vmem [shape: f32[16,64], index: 4, kind: input, shape index: {}]   ;;  %s1362_s5 = inlined_call_operand.vmem [shape: f32[16,16], index: 5, kind: input, shape index: {}]   ;;  %s1363_s6 = inlined_call_operand.vmem [shape: f32[256,64], index: 6, kind: input, shape index: {}]   ;;  %s1364_s7 = inlined_call_operand.vmem [shape: f32[64,16], index: 7, kind: input, shape index: {}]   ;;  %s1365_s8 = inlined_call_operand.vmem [shape: f32[64,256], index: 8, kind: input, shape index: {}]   ;;  %s1366_s9 = inlined_call_operand.vmem [shape: f32[16,64], index: 9, kind: input, shape index: {}]   ;;  %s1367_s10 = inlined_call_operand.hbm [shape: f32[2,256], index: 10, kind: output, shape index: {}]  }
   0x1   :  { %v39_v0 = vld [vmem:[%s1358_s1 + $0x8] sm:$0xff]  ;;  %v41_v1 = vld [vmem:[%s1358_s1 + $0x18] sm:$0x1]  ;;  %v38_v2 = vld [vmem:[%s1358_s1] sm:$0xff]  ;;  %120 = vmatprep.mubr.f32.mxu0 %v1033_v6 }
   0x2   :  { %v907_v3 = vpack.c.bf16 %v41_v1, %v39_v0  ;;  %vm908_vm2 = vmpackc.low %vm49_vm0, %vm1032_vm1  ;;  %v40_v4 = vld [vmem:[%s1358_s1 + $0x10] sm:$0x1]  ;;  %v36_v7 = vld [vmem:[%s1357_s0] sm:$0xff] }
   0x3   :  { %v910_v5 = vpack.c.bf16 %v40_v4, %v38_v2  ;;  %v149_v8 = vld [vmem:[%s1363_s6 + $0x80] sm:$0xff]  ;;  %v150_v9 = vld [vmem:[%s1363_s6 + $0x88] sm:$0xff]  ;;  %v151_v13 = vld [vmem:[%s1363_s6 + $0x90] sm:$0xff] }
   0x4   :  { %909 = vmatprep.subr.msk.bf16.mxu0 %vm908_vm2, %v907_v3  ;;  %v913_v10 = vpack.c.bf16 %v150_v9, %v149_v8  ;;  %v133_v11 = vld [vmem:[%s1363_s6] sm:$0xff]  ;;  %v134_v12 = vld [vmem:[%s1363_s6 + $0x8] sm:$0xff]  ;;  %v152_v15 = vld [vmem:[%s1363_s6 + $0x98] sm:$0xff] }
   0x5   :  { %912 = vmatpush1.bf16.msk.msra.mxu0 %vm908_vm2, %v910_v5  ;;  %v915_v14 = vpack.c.bf16 %v134_v12, %v133_v11  ;;  %v135_v16 = vld [vmem:[%s1363_s6 + $0x10] sm:$0xff]  ;;  %v136_v17 = vld [vmem:[%s1363_s6 + $0x18] sm:$0xff]  ;;  %v917_v18 = vpack.c.bf16 %v152_v15, %v151_v13  ;;  %v153_v19 = vld [vmem:[%s1363_s6 + $0xa0] sm:$0xff] }
   0x6   :  { %914 = vmatprep.subr.bf16.mxu1 %v913_v10  ;;  %v154_v20 = vld [vmem:[%s1363_s6 + $0xa8] sm:$0xff]  ;;  %v919_v21 = vpack.c.bf16 %v136_v17, %v135_v16  ;;  %v137_v23 = vld [vmem:[%s1363_s6 + $0x20] sm:$0xff]  ;;  %v155_v26 = vld [vmem:[%s1363_s6 + $0xb0] sm:$0xff] }
   0x7   :  { %916 = vmatpush3.bf16.msra.mxu1 %v915_v14  ;;  %v921_v22 = vpack.c.bf16 %v154_v20, %v153_v19  ;;  %v138_v24 = vld [vmem:[%s1363_s6 + $0x28] sm:$0xff]  ;;  %v156_v27 = vld [vmem:[%s1363_s6 + $0xb8] sm:$0xff]  ;;  %v139_v30 = vld [vmem:[%s1363_s6 + $0x30] sm:$0xff] }
   0x8   :  { %804 = vmatmul.mubr.msk.f32.vlgmr.msra.gmra.mrb[0].mxu0 %vm42_vm3, %v36_v7  ;;  %918 = vmatprep.subr.bf16.mxu1 %v917_v18  ;;  %v37_v25 = vld [vmem:[%s1357_s0 + $0x8] sm:$0xff]  ;;  %v923_v28 = vpack.c.bf16 %v138_v24, %v137_v23  ;;  %v925_v29 = vpack.c.bf16 %v156_v27, %v155_v26  ;;  %v140_v31 = vld [vmem:[%s1363_s6 + $0x38] sm:$0xff]  ;;  %v157_v32 = vld [vmem:[%s1363_s6 + $0xc0] sm:$0xff] }
   0x9   :  { %126 = vmatprep.mubr.f32.mxu0 %v1033_v6  ;;  %v158_v33 = vld [vmem:[%s1363_s6 + $0xc8] sm:$0xff] }
   0xb   :  { %920 = vmatpush3.bf16.msra.mxu1 %v919_v21 }
   0xc   :  { %805 = vmatmul.mubr.msk.f32.gmra.mrb[2].mxu0 %vm42_vm3, %v37_v25  ;;  %922 = vmatprep.subr.bf16.mxu1 %v921_v22 }
   0xd   :  { %15 = vsyncpa [#allocation3], 0  ;;  %v927_v34 = vpack.c.bf16 %v140_v31, %v139_v30  ;;  %v929_v35 = vpack.c.bf16 %v158_v33, %v157_v32  ;;  %v141_v36 = vld [vmem:[%s1363_s6 + $0x40] sm:$0xff]  ;;  %v142_v37 = vld [vmem:[%s1363_s6 + $0x48] sm:$0xff]  ;;  %vm248_vm4 = vcmask 523264   ;;  %vm441_vm5 = vcmask 130048  }
   0xe   :  { %v159_v38 = vld [vmem:[%s1363_s6 + $0xd0] sm:$0xff]  ;;  %v160_v39 = vld [vmem:[%s1363_s6 + $0xd8] sm:$0xff]  ;;  %v931_v40 = vpack.c.bf16 %v142_v37, %v141_v36  ;;  %v161_v44 = vld [vmem:[%s1363_s6 + $0xe0] sm:$0xff]  ;;  %s1034_s18 = smov [#allocation2]  }
   0xf   :  { %924 = vmatpush3.bf16.msra.mxu1 %v923_v28  ;;  %v933_v41 = vpack.c.bf16 %v160_v39, %v159_v38  ;;  %v143_v42 = vld [vmem:[%s1363_s6 + $0x50] sm:$0xff]  ;;  %v144_v43 = vld [vmem:[%s1363_s6 + $0x58] sm:$0xff]  ;;  %v162_v45 = vld [vmem:[%s1363_s6 + $0xe8] sm:$0xff]  ;;  %s794_s19 = sshll.u32 %s1034_s18, 4  ;;  %s795_s19 = int_to_ptr.vmem [resolvable:$true] %s794_s19 }
  0x10   :  { %926 = vmatprep.subr.bf16.mxu1 %v925_v29  ;;  %v935_v46 = vpack.c.bf16 %v144_v43, %v143_v42  ;;  %v937_v47 = vpack.c.bf16 %v162_v45, %v161_v44  ;;  %v145_v48 = vld [vmem:[%s1363_s6 + $0x60] sm:$0xff]  ;;  %v146_v49 = vld [vmem:[%s1363_s6 + $0x68] sm:$0xff]  ;;  %v163_v50 = vld [vmem:[%s1363_s6 + $0xf0] sm:$0xff]  ;;  %s1008_s20 = scalar_lea.vmem %s795_s19, 64  ;;  %p1013_p1 = scmp.lt.s32.totalorder %s795_s19, %s795_s19 }
  0x11   :  { %v164_v51 = vld [vmem:[%s1363_s6 + $0xf8] sm:$0xff]  ;;  %v939_v52 = vpack.c.bf16 %v146_v49, %v145_v48  ;;  %v147_v54 = vld [vmem:[%s1363_s6 + $0x70] sm:$0xff]  ;;  %v240_v57 = vld [vmem:[%s1364_s7] sm:$0xff]  ;;  %p1009_p0 = scmp.ne.s32.totalorder %s795_s19, %s1008_s20  ;;  %p1014_p2 = scmp.lt.s32.totalorder %s1008_s20, %s1008_s20 }
  0x12   :  { %v941_v53 = vpack.c.bf16 %v164_v51, %v163_v50  ;;  %v148_v55 = vld [vmem:[%s1363_s6 + $0x78] sm:$0xff]  ;;  %v241_v58 = vld [vmem:[%s1364_s7 + $0x8] sm:$0xff]  ;;  %v242_v59 = vld [vmem:[%s1364_s7 + $0x10] sm:$0xff] }
  0x13   :  { %928 = vmatpush3.bf16.msra.mxu1 %v927_v34  ;;  %v943_v56 = vpack.c.bf16 %v148_v55, %v147_v54  ;;  %v945_v60 = vpack.c.bf16 %v241_v58, %v240_v57  ;;  %v243_v61 = vld [vmem:[%s1364_s7 + $0x18] sm:$0xff]  ;;  %v244_v63 = vld [vmem:[%s1364_s7 + $0x20] sm:$0xff]  ;;  %v245_v0 = vld [vmem:[%s1364_s7 + $0x28] sm:$0xff]  ;;  %p1015_p3 = por %p1014_p2, %p1013_p1 }
  0x14   :  { %930 = vmatprep.subr.bf16.mxu1 %v929_v35  ;;  %v949_v62 = vpack.c.bf16 %v243_v61, %v242_v59  ;;  %v953_v1 = vpack.c.bf16 %v245_v0, %v244_v63  ;;  %v246_v7 = vld [vmem:[%s1364_s7 + $0x30] sm:$0xff]  ;;  %v247_v8 = vld [vmem:[%s1364_s7 + $0x38] sm:$0xff]  ;;  %v331_v10 = vld [vmem:[%s1365_s8 + $0x8] sm:$0xff] }
  0x15   :  { %946 = vmatprep.subr.bf16.mxu0 %v945_v60  ;;  %v957_v9 = vpack.c.bf16 %v247_v8, %v246_v7  ;;  %v333_v11 = vld [vmem:[%s1365_s8 + $0x18] sm:$0xff]  ;;  %v330_v13 = vld [vmem:[%s1365_s8] sm:$0xff]  ;;  %v332_v14 = vld [vmem:[%s1365_s8 + $0x10] sm:$0xff]  ;;  %p1016_p4 = pnand %p1015_p3, %p1009_p0 }
  0x16   :  { %948 = vmatpush3.bf16.msra.mxu0 %v945_v60  ;;  %v961_v12 = vpack.c.bf16 %v333_v11, %v331_v10  ;;  %v963_v15 = vpack.c.bf16 %v332_v14, %v330_v13  ;;  %v335_v16 = vld [vmem:[%s1365_s8 + $0x28] sm:$0xff]  ;;  %v337_v17 = vld [vmem:[%s1365_s8 + $0x38] sm:$0xff]  ;;  %v334_v19 = vld [vmem:[%s1365_s8 + $0x20] sm:$0xff] }
  0x17   :  { %932 = vmatpush3.bf16.msra.mxu1 %v931_v40  ;;  %950 = vmatprep.subr.bf16.mxu0 %v949_v62  ;;  %v965_v18 = vpack.c.bf16 %v337_v17, %v335_v16  ;;  %v336_v20 = vld [vmem:[%s1365_s8 + $0x30] sm:$0xff]  ;;  %v339_v22 = vld [vmem:[%s1365_s8 + $0x48] sm:$0xff]  ;;  %v341_v23 = vld [vmem:[%s1365_s8 + $0x58] sm:$0xff] }
  0x18   :  { %934 = vmatprep.subr.bf16.mxu1 %v933_v41  ;;  %v967_v21 = vpack.c.bf16 %v336_v20, %v334_v19  ;;  %v969_v24 = vpack.c.bf16 %v341_v23, %v339_v22  ;;  %v338_v25 = vld [vmem:[%s1365_s8 + $0x40] sm:$0xff]  ;;  %v340_v26 = vld [vmem:[%s1365_s8 + $0x50] sm:$0xff]  ;;  %v343_v28 = vld [vmem:[%s1365_s8 + $0x68] sm:$0xff] }
  0x19   :  { %v971_v27 = vpack.c.bf16 %v340_v26, %v338_v25  ;;  %v345_v29 = vld [vmem:[%s1365_s8 + $0x78] sm:$0xff]  ;;  %v342_v31 = vld [vmem:[%s1365_s8 + $0x60] sm:$0xff]  ;;  %v344_v32 = vld [vmem:[%s1365_s8 + $0x70] sm:$0xff] }
  0x1a   :  { %952 = vmatpush3.bf16.msra.mxu0 %v949_v62  ;;  %v973_v30 = vpack.c.bf16 %v345_v29, %v343_v28  ;;  %v975_v33 = vpack.c.bf16 %v344_v32, %v342_v31  ;;  %v439_v40 = vld [vmem:[%s1366_s9] sm:$0xff]  ;;  %v440_v41 = vld [vmem:[%s1366_s9 + $0x8] sm:$0xff]  ;;  %v429_v14 = vld [vmem:[%s1360_s3 + $0x10] sm:$0xff] }
  0x1b   :  { %936 = vmatpush3.bf16.msra.mxu1 %v935_v46  ;;  %954 = vmatprep.subr.bf16.mxu0 %v953_v1  ;;  %v977_v42 = vpack.c.bf16 %v440_v41, %v439_v40  ;;  %v532_v43 = vld [vmem:[%s1362_s5 + $0x8] sm:$0xff]  ;;  %v531_v44 = vld [vmem:[%s1362_s5] sm:$0xff] }
  0x1c   :  { %938 = vmatprep.subr.bf16.mxu1 %v937_v47  ;;  %v526_v60 = vld [vmem:[%s1361_s4 + $0x8] sm:$0xff]  ;;  %v525_v63 = vld [vmem:[%s1361_s4] sm:$0xff] }
  0x1d   :  { %v427_v10 = vld [vmem:[%s1360_s3] sm:$0xff]  ;;  %v428_v11 = vld [vmem:[%s1360_s3 + $0x8] sm:$0xff] }
  0x1e   :  { %956 = vmatpush3.bf16.msra.mxu0 %v953_v1  ;;  %v701_v31 = vld [vmem:[%s1359_s2] sm:$0x3] }
  0x1f   :  { %940 = vmatpush3.bf16.msra.mxu1 %v939_v52  ;;  %958 = vmatprep.subr.bf16.mxu0 %v957_v9 }
  0x20   :  { %942 = vmatprep.subr.bf16.mxu1 %v941_v53 }
  0x22   :  { %960 = vmatpush3.bf16.msra.mxu0 %v957_v9 }
  0x23   :  { %944 = vmatpush3.bf16.msra.mxu1 %v943_v56  ;;  %962 = vmatprep.subr.bf16.mxu0 %v961_v12 }
  0x24   :  { %986 = vmatprep.subr.bf16.mxu1 %v961_v12 }
  0xdb   :  { %v1226_v2 = vpop.f32.mrb[0].mxu0 }
  0xdc   :  { %v1228_v3 = vpop.f32.mrb[1].mxu0 }
  0xdd   :  { %229 = vmatprep.mubr.f32.mxu1 %v1228_v3 }
  0xde   :  { %230 = vmatmul.mubr.f32.vlgmr.msra.gmra.mrb[0].mxu1 %v1226_v2 }
  0xdf   :  { %v1232_v4 = vpop.f32.mrb[2].mxu0  ;;  %988 = vmatpush1.bf16.msra.mxu1 %v963_v15 }
  0xe0   :  { %v1234_v5 = vpop.f32.mrb[3].mxu0  ;;  %990 = vmatprep.subr.bf16.mxu1 %v965_v18 }
  0xe1   :  { %234 = vmatprep.mubr.f32.mxu1 %v1234_v5 }
  0xe2   :  { %235 = vmatmul.mubr.f32.gmra.mrb[2].mxu1 %v1232_v4 }
  0xe3   :  { %688 = vmatprep.mubr.f32.mxu1 %v1033_v6  ;;  %992 = vmatpush1.bf16.msra.mxu1 %v967_v21 }
  0xe4   :  { %994 = vmatprep.subr.bf16.mxu1 %v969_v24 }
  0xe7   :  { %996 = vmatpush1.bf16.msra.mxu1 %v971_v27 }
  0xe8   :  { %998 = vmatprep.subr.bf16.mxu1 %v973_v30 }
  0xeb   :  { %1000 = vmatpush1.bf16.msra.mxu1 %v975_v33 }
 0x1b1   :  { %v850_v34 = vpop.f32.mrb[0].mxu1 }
 0x1b2   :  { %v851_v35 = vpop.f32.mrb[1].mxu1 }
 0x1b3   :  { %v852_v36 = vadd.f32 %v851_v35, %v850_v34 }
 0x1b5   :  { %v853_v37 = vpop.f32.mrb[2].mxu1  ;;  %890 = vmatprep.mubr.msk.f32.mxu0 %vm248_vm4, %v852_v36 }
 0x1b6   :  { %v854_v38 = vpop.f32.mrb[3].mxu1 }
 0x1b7   :  { %v855_v39 = vadd.f32 %v854_v38, %v853_v37 }
 0x1b9   :  { %891 = vmatmul.mubr.msk.f32.vlgmr.msra.gmra.mrb[4].mxu0 %vm248_vm4, %v855_v39 }
 0x1ba   :  { %964 = vmatpush1.bf16.msra.mxu0 %v963_v15  ;;  %410 = vmatprep.mubr.f32.mxu0 %v1033_v6 }
 0x1bb   :  { %966 = vmatprep.subr.bf16.mxu0 %v965_v18 }
 0x1be   :  { %968 = vmatpush1.bf16.msra.mxu0 %v967_v21 }
 0x1bf   :  { %970 = vmatprep.subr.bf16.mxu0 %v969_v24 }
 0x1c2   :  { %972 = vmatpush1.bf16.msra.mxu0 %v971_v27 }
 0x1c3   :  { %974 = vmatprep.subr.bf16.mxu0 %v973_v30 }
 0x1c6   :  { %976 = vmatpush1.bf16.msra.mxu0 %v975_v33 }
 0x1c7   :  { %978 = vmatprep.subr.bf16.mxu0 %v977_v42 }
 0x1c9   :  { %808 = vmatmul.mubr.msk.f32.vlgmr.msra.gmra.mrb[6].mxu0 %vm248_vm4, %v852_v36 }
 0x1ca   :  { %416 = vmatprep.mubr.f32.mxu0 %v1033_v6  ;;  %980 = vmatpush3.bf16.msra.mxu0 %v977_v42 }
 0x1cb   :  { %982 = vmatprep.subr.bf16.mxu0 %v977_v42 }
 0x1cd   :  { %809 = vmatmul.mubr.msk.f32.gmra.mrb[8].mxu0 %vm248_vm4, %v855_v39 }
 0x28c   :  { %v892_v45 = vpop.f32.mrb[4].mxu0 }
 0x28d   :  { %v534_v46 = vsub.f32 %v892_v45, %v532_v43  ;;  %v321_v47 = vpop.f32.mrb[5].mxu0 }
 0x28e   :  { %v533_v48 = vsub.f32 %v321_v47, %v531_v44  ;;  %897 = vmatprep.mubr.msk.f32.mxu0 %vm441_vm5, %v321_v47 }
 0x28f   :  { %898 = vmatmul.mubr.msk.f32.vlgmr.msra.gmra.mrb[10].mxu0 %vm441_vm5, %v892_v45  ;;  %v536_v50 = vand.u32 2147483647, %v534_v46 }
 0x290   :  { %v535_v49 = vand.u32 2147483647, %v533_v48  ;;  %984 = vmatpush3.bf16.msra.mxu0 %v977_v42 }
 0x292   :  { %904 = vmatprep.mubr.msk.f32.mxu0 %vm441_vm5, %v535_v49 }
 0x293   :  { %905 = vmatmul.mubr.msk.f32.vlgmr.msra.gmra.mrb[12].mxu0 %vm441_vm5, %v536_v50 }
 0x294   :  { %769 = vmatprep.mubr.f32.mxu0 %v1033_v6 }
 0x29c   :  { %v412_v51 = vpop.f32.mrb[6].mxu0 }
 0x29d   :  { %v423_v52 = vsub.f32 %v1226_v2, %v412_v51  ;;  %v414_v53 = vpop.f32.mrb[7].mxu0 }
 0x29e   :  { %v424_v54 = vsub.f32 %v1228_v3, %v414_v53 }
 0x29f   :  { %v431_v12 = vsub.f32 %v423_v52, %v427_v10 }
 0x2a0   :  { %v418_v55 = vpop.f32.mrb[8].mxu0  ;;  %v432_v13 = vsub.f32 %v424_v54, %v428_v11 }
 0x2a1   :  { %v425_v56 = vsub.f32 %v1232_v4, %v418_v55  ;;  %v420_v57 = vpop.f32.mrb[9].mxu0  ;;  %v435_v16 = vand.u32 2147483647, %v431_v12 }
 0x2a2   :  { %v426_v58 = vsub.f32 %v1234_v5, %v420_v57  ;;  %v436_v19 = vand.u32 2147483647, %v432_v13 }
 0x2a3   :  { %v433_v15 = vsub.f32 %v425_v56, %v429_v14 }
 0x2a5   :  { %v437_v23 = vand.u32 2147483647, %v433_v15 }
 0x362   :  { %v899_v59 = vpop.f32.mrb[10].mxu0 }
 0x363   :  { %v524_v61 = vsub.f32 %v855_v39, %v899_v59  ;;  %v514_v62 = vpop.f32.mrb[11].mxu0 }
 0x364   :  { %v523_v0 = vsub.f32 %v852_v36, %v514_v62 }
 0x365   :  { %v528_v1 = vsub.f32 %v524_v61, %v526_v60 }
 0x366   :  { %v527_v2 = vsub.f32 %v523_v0, %v525_v63  ;;  %v906_v3 = vpop.f32.mrb[12].mxu0 }
 0x367   :  { %v530_v7 = vand.u32 2147483647, %v528_v1  ;;  %v609_v4 = vpop.f32.mrb[13].mxu0 }
 0x368   :  { %v529_v8 = vand.u32 2147483647, %v527_v2 }
 0x369   :  { %v615_v9 = vadd.f32 %v906_v3, %v530_v7 }
 0x36a   :  { %v610_v5 = vadd.f32 %v609_v4, %v529_v8 }
 0x36c   :  { %814 = vmatmul.mubr.msk.f32.vlgmr.msra.gmra.mrb[4].mxu1 %vm248_vm4, %v610_v5 }
 0x36d   :  { %694 = vmatprep.mubr.f32.mxu1 %v1033_v6  ;;  %v430_v6 = vld [vmem:[%s1360_s3 + $0x18] sm:$0xff] }
 0x36e   :  { %v434_v17 = vsub.f32 %v426_v58, %v430_v6 }
 0x370   :  { %815 = vmatmul.mubr.msk.f32.gmra.mrb[6].mxu1 %vm248_vm4, %v615_v9  ;;  %v438_v25 = vand.u32 2147483647, %v434_v17 }
 0x43f   :  { %v690_v18 = vpop.f32.mrb[4].mxu1 }
 0x440   :  { %v691_v20 = vadd.f32 %v690_v18, %v435_v16  ;;  %v692_v21 = vpop.f32.mrb[5].mxu1 }
 0x441   :  { %v693_v22 = vadd.f32 %v692_v21, %v436_v19 }
 0x443   :  { %v696_v24 = vpop.f32.mrb[6].mxu1 }
 0x444   :  { %v697_v26 = vadd.f32 %v696_v24, %v437_v23  ;;  %v698_v27 = vpop.f32.mrb[7].mxu1 }
 0x445   :  { %v699_v28 = vadd.f32 %v698_v27, %v438_v25 }
 0x446   :  { %v1003_v29 = vpack.c.bf16 %v697_v26, %v691_v20 }
 0x447   :  { %v1001_v30 = vpack.c.bf16 %v699_v28, %v693_v22 }
 0x449   :  { %1002 = vmatprep.subr.bf16.mxu0 %v1001_v30 }
 0x44a   :  { %1004 = vmatpush1.bf16.msra.mxu0 %v1003_v29 }
 0x44d   :  { %816 = vmatmul.mubr.msk.f32.vlgmr.msra.gmra.mrb[14].mxu0 %vm441_vm5, %v701_v31 }
 0x520   :  { %v771_v32 = vpop.f32.mrb[14].mxu0 }
 0x521   :  { %v773_v33 = vpop.f32.mrb[15].mxu0 }
 0x522   :  { %v778_v34 = vcombine.low %v771_v32, %v773_v33 }
 0x524   :  { %817 = vst.sshfl [vmem:[#allocation2] sm:$0x33 pattern:$0x76325410] %v778_v34 }
 0x525   :  { %1019 = shalt.err (!%p1016_p4)
}
 0x526   :  { %s1020_s2 = scalar_lea.hbm %s1367_s10, 64 }
 0x527   :  { %p1021_p5 = scmp.ne.s32.totalorder %s1367_s10, %s1020_s2  ;;  %p1024_p6 = scmp.lt.u32.totalorder %s1020_s2, %s1367_s10 }
 0x529   :  { %p1026_p7 = pnand %p1024_p6, %p1021_p5 }
 0x52b   :  { %1029 = shalt.err (!%p1026_p7)
}
 0x52c   :  { %797 = dma.vmem_to_hbm [thread:$0]  %s795_s19, 64, %s1367_s10, [#allocation3]  }
 0x52d   :  { %1030 = dma.done.wait [#allocation3], 64  }
 0x52e   :  { %1031 = vsyncadd [#allocation3], 4294967232 }
 0x52f   :  { %801 = vsyncpa [#allocation3], 1 }

</bundles_post_ra>
